<compile_context>
chip_gen: v5e
topology: v5e:2x2
jax: 0.10.0
libtpu: 0.0.40
codegen_flags: <defaults>
</compile_context>

<pallas_src>
import functools

import jax
import jax.numpy as jnp
from jax import lax
from jax.experimental import pallas as pl
from jax.experimental.pallas import tpu as pltpu


def rotanet_kernel(x_ref, w1_ref, b1_ref, w2_ref, b2_ref, w3_ref, b3_ref, o_ref):
    x = x_ref[...]                                                  # (TB, 18) f32
    # Layer 1: (14,18) x (TB,18) contracting both minor dims -> feature-major
    # (14, TB); avoids any host-side transpose of x.
    h1 = lax.dot_general(w1_ref[...], x,
                         dimension_numbers=(((1,), (1,)), ((), ())),
                         preferred_element_type=jnp.float32) + b1_ref[...]
    h1 = jnp.maximum(h1, 0.0)                                       # (14, TB)
    # Layer 2: (14,14) @ (14,TB) + (14,1), ReLU
    h2 = jnp.dot(w2_ref[...], h1, preferred_element_type=jnp.float32) + b2_ref[...]
    h2 = jnp.maximum(h2, 0.0)                                       # (14, TB)
    # Output layer 14 -> 1: broadcast FMA + sublane reduce (no N=1 MXU push),
    # then Tanh. Result stays lane-dense: (1, TB).
    out = jnp.sum(h2 * w3_ref[...], axis=0, keepdims=True) + b3_ref[...]
    o_ref[...] = jnp.tanh(out)


def _round_up(n, m):
    return ((n + m - 1) // m) * m


@functools.partial(jax.jit, static_argnames=("tb",))
def rotanet_forward(x, params, tb=16384):
    """x: (B, 18) float32 -> (B, 1) float32."""
    w1, b1, w2, b2, w3, b3 = params
    B = x.shape[0]
    x = x.astype(jnp.float32)

    # Batch tile: multiple of 128 (lane-dense output). Hard cap 16384 so the
    # double-buffered (TB, 18) x blocks (18 lane-pads to 128 -> 2 * TB * 512 B
    # = 16 MiB) plus feature-major temps stay well inside v7x's 64 MiB per-TC
    # VMEM while still amortizing per-grid-step overhead.
    TB_cap = max(128, (min(tb, 16384) // 128) * 128)
    if B <= TB_cap:
        # Split mid-size batches into >=2 tiles so both v7x TensorCores get
        # work via the "parallel" grid axis (no effect on single-TC v5e/v6e).
        TB = max(128, _round_up(B, 256) // 2)
    else:
        TB = TB_cap
    nblocks = (B + TB - 1) // TB
    Bp = nblocks * TB  # padded OUTPUT length only; input x is never copied/padded

    # Parameters: full-array blocks with constant index maps -> VMEM resident.
    const = lambda arr: pl.BlockSpec(arr.shape, lambda i: (0, 0))

    out = pl.pallas_call(
        rotanet_kernel,
        out_shape=jax.ShapeDtypeStruct((1, Bp), jnp.float32),
        grid=(nblocks,),
        in_specs=[
            # Native (B, 18) layout; last grid step may read a partial block
            # (garbage rows are independent and sliced off below).
            pl.BlockSpec((TB, 18), lambda i: (i, 0)),
            const(w1), const(b1),
            const(w2), const(b2),
            const(w3), const(b3),
        ],
        out_specs=pl.BlockSpec((1, TB), lambda i: (0, i)),
        compiler_params=pltpu.CompilerParams(
            dimension_semantics=("parallel",),        # shard batch tiles across TCs
            vmem_limit_bytes=64 * 1024 * 1024,        # above v5e/v6e scoped defaults
        ),
    )(x, w1, b1, w2, b2, w3, b3)

    return out[0, :B].reshape(B, 1)


def init_params(key):
    """PyTorch nn.Linear default init: W, b ~ U(-1/sqrt(fan_in), 1/sqrt(fan_in)).
    Weights stored as (out, in) like PyTorch; biases as (out, 1) columns; the
    final layer weight is stored as a (14, 1) column for the in-kernel reduce."""
    def linear(key, fan_in, fan_out):
        kw, kb = jax.random.split(key)
        bound = 1.0 / jnp.sqrt(jnp.float32(fan_in))
        w = jax.random.uniform(kw, (fan_out, fan_in), jnp.float32, -bound, bound)
        b = jax.random.uniform(kb, (fan_out, 1), jnp.float32, -bound, bound)
        return w, b

    k1, k2, k3 = jax.random.split(key, 3)
    w1, b1 = linear(k1, 18, 14)
    w2, b2 = linear(k2, 14, 14)
    w3, b3 = linear(k3, 14, 1)
    return (w1, b1, w2, b2, w3.T, b3)     # w3 -> (14, 1), b3 -> (1, 1)


def rotanet_ref(x, params):
    """Pure-JAX reference for correctness checking."""
    w1, b1, w2, b2, w3, b3 = params
    h = jnp.maximum(x @ w1.T + b1.T, 0.0)
    h = jnp.maximum(h @ w2.T + b2.T, 0.0)
    return jnp.tanh(h @ w3 + b3)


if __name__ == "__main__":
    key = jax.random.PRNGKey(0)
    k_params, k_x1, k_x2 = jax.random.split(key, 3)

    params = init_params(k_params)

    # Small batch: single grid step with a partial input block.
    x_small = jax.random.normal(k_x1, (8, 18), dtype=jnp.float32)
    out_small = jax.block_until_ready(rotanet_forward(x_small, params))
    ref_small = rotanet_ref(x_small, params)
    assert out_small.shape == (8, 1), out_small.shape
    assert jnp.allclose(out_small, ref_small, atol=1e-5, rtol=1e-5)

    # Ragged batch: >=2 grid steps (TC sharding path) + partial trailing block.
    x_big = jax.random.normal(k_x2, (300, 18), dtype=jnp.float32)
    out_big = jax.block_until_ready(rotanet_forward(x_big, params))
    ref_big = rotanet_ref(x_big, params)
    assert out_big.shape == (300, 1), out_big.shape
    assert jnp.allclose(out_big, ref_big, atol=1e-5, rtol=1e-5)

    print("KERNEL_OK")
</pallas_src>

<mosaic_0001>
module attributes {stable_mosaic.version = 11 : i64} {
  func.func @rotanet_kernel(%arg0: i32, %arg1: memref<128x18xf32, #tpu.memory_space<vmem>>, %arg2: memref<14x18xf32, #tpu.memory_space<vmem>>, %arg3: memref<14x1xf32, #tpu.memory_space<vmem>>, %arg4: memref<14x14xf32, #tpu.memory_space<vmem>>, %arg5: memref<14x1xf32, #tpu.memory_space<vmem>>, %arg6: memref<14x1xf32, #tpu.memory_space<vmem>>, %arg7: memref<1x1xf32, #tpu.memory_space<vmem>>, %arg8: memref<1x128xf32, #tpu.memory_space<vmem>>) attributes {dimension_semantics = [#tpu.dimension_semantics<parallel>], iteration_bounds = array<i64: 1>, scalar_prefetch = 0 : i64, scratch_operands = 0 : i64, tpu.core_type = #tpu.core_type<tc>, window_params = [{transform_indices = @transform_0, window_bounds = array<i64: 128, 18>}, {pipeline_mode = #tpu.pipeline_mode<synchronous>, transform_indices = @transform_1, window_bounds = array<i64: 14, 18>}, {pipeline_mode = #tpu.pipeline_mode<synchronous>, transform_indices = @transform_2, window_bounds = array<i64: 14, 1>}, {pipeline_mode = #tpu.pipeline_mode<synchronous>, transform_indices = @transform_3, window_bounds = array<i64: 14, 14>}, {pipeline_mode = #tpu.pipeline_mode<synchronous>, transform_indices = @transform_4, window_bounds = array<i64: 14, 1>}, {pipeline_mode = #tpu.pipeline_mode<synchronous>, transform_indices = @transform_5, window_bounds = array<i64: 14, 1>}, {pipeline_mode = #tpu.pipeline_mode<synchronous>, transform_indices = @transform_6, window_bounds = array<i64: 1, 1>}, {transform_indices = @transform_7, window_bounds = array<i64: 1, 128>}]} {
    %c0 = arith.constant 0 : index
    %c0_0 = arith.constant 0 : index
    %0 = vector.load %arg1[%c0, %c0_0] : memref<128x18xf32, #tpu.memory_space<vmem>>, vector<128x18xf32>
    %c0_1 = arith.constant 0 : index
    %c0_2 = arith.constant 0 : index
    %1 = vector.load %arg2[%c0_1, %c0_2] : memref<14x18xf32, #tpu.memory_space<vmem>>, vector<14x18xf32>
    %cst = arith.constant dense<0.000000e+00> : vector<14x128xf32>
    %2 = tpu.matmul %1, %0, %cst {dimension_numbers = #tpu.dot_dimension_numbers<[1], [1], [0], [0], [0, 0, 1, 0], [], []>} : vector<14x18xf32>, vector<128x18xf32>, vector<14x128xf32> -> vector<14x128xf32>
    %c0_3 = arith.constant 0 : index
    %c0_4 = arith.constant 0 : index
    %3 = vector.load %arg3[%c0_3, %c0_4] : memref<14x1xf32, #tpu.memory_space<vmem>>, vector<14x1xf32>
    %4 = vector.broadcast %3 : vector<14x1xf32> to vector<14x128xf32>
    %5 = arith.addf %2, %4 : vector<14x128xf32>
    %cst_5 = arith.constant 0.000000e+00 : f32
    %6 = vector.broadcast %cst_5 : f32 to vector<14x128xf32>
    %7 = arith.maximumf %5, %6 : vector<14x128xf32>
    %c0_6 = arith.constant 0 : index
    %c0_7 = arith.constant 0 : index
    %8 = vector.load %arg4[%c0_6, %c0_7] : memref<14x14xf32, #tpu.memory_space<vmem>>, vector<14x14xf32>
    %cst_8 = arith.constant dense<0.000000e+00> : vector<14x128xf32>
    %9 = tpu.matmul %8, %7, %cst_8 {dimension_numbers = #tpu.dot_dimension_numbers<[1], [0], [0], [1], [0, 0, 1, 1], [], []>} : vector<14x14xf32>, vector<14x128xf32>, vector<14x128xf32> -> vector<14x128xf32>
    %c0_9 = arith.constant 0 : index
    %c0_10 = arith.constant 0 : index
    %10 = vector.load %arg5[%c0_9, %c0_10] : memref<14x1xf32, #tpu.memory_space<vmem>>, vector<14x1xf32>
    %11 = vector.broadcast %10 : vector<14x1xf32> to vector<14x128xf32>
    %12 = arith.addf %9, %11 : vector<14x128xf32>
    %cst_11 = arith.constant 0.000000e+00 : f32
    %13 = vector.broadcast %cst_11 : f32 to vector<14x128xf32>
    %14 = arith.maximumf %12, %13 : vector<14x128xf32>
    %c0_12 = arith.constant 0 : index
    %c0_13 = arith.constant 0 : index
    %15 = vector.load %arg6[%c0_12, %c0_13] : memref<14x1xf32, #tpu.memory_space<vmem>>, vector<14x1xf32>
    %16 = vector.broadcast %15 : vector<14x1xf32> to vector<14x128xf32>
    %17 = arith.mulf %14, %16 : vector<14x128xf32>
    %cst_14 = arith.constant dense<0.000000e+00> : vector<128xf32>
    %18 = vector.multi_reduction <add>, %17, %cst_14 [0] : vector<14x128xf32> to vector<128xf32>
    %19 = vector.shape_cast %18 : vector<128xf32> to vector<1x128xf32>
    %c0_15 = arith.constant 0 : index
    %c0_16 = arith.constant 0 : index
    %20 = vector.load %arg7[%c0_15, %c0_16] : memref<1x1xf32, #tpu.memory_space<vmem>>, vector<1x1xf32>
    %21 = vector.broadcast %20 : vector<1x1xf32> to vector<1x128xf32>
    %22 = arith.addf %19, %21 : vector<1x128xf32>
    %23 = math.tanh %22 : vector<1x128xf32>
    %c0_17 = arith.constant 0 : index
    %c0_18 = arith.constant 0 : index
    %24 = vector.load %arg8[%c0_17, %c0_18] : memref<1x128xf32, #tpu.memory_space<vmem>>, vector<1x128xf32>
    tpu.vector_store %arg8[%c0_17, %c0_18], %23 {strides = array<i32>} : memref<1x128xf32, #tpu.memory_space<vmem>>, vector<1x128xf32>,
    return
  }
  func.func @transform_0(%arg0: i32) -> (i32, i32) {
    %c0_i32 = arith.constant 0 : i32
    %c0_i32_0 = arith.constant 0 : i32
    return %arg0, %c0_i32 : i32, i32
  }
  func.func @transform_1(%arg0: i32) -> (i32, i32) {
    %c0_i32 = arith.constant 0 : i32
    %c0_i32_0 = arith.constant 0 : i32
    %c0_i32_1 = arith.constant 0 : i32
    return %c0_i32, %c0_i32_0 : i32, i32
  }
  func.func @transform_2(%arg0: i32) -> (i32, i32) {
    %c0_i32 = arith.constant 0 : i32
    %c0_i32_0 = arith.constant 0 : i32
    %c0_i32_1 = arith.constant 0 : i32
    return %c0_i32, %c0_i32_0 : i32, i32
  }
  func.func @transform_3(%arg0: i32) -> (i32, i32) {
    %c0_i32 = arith.constant 0 : i32
    %c0_i32_0 = arith.constant 0 : i32
    %c0_i32_1 = arith.constant 0 : i32
    return %c0_i32, %c0_i32_0 : i32, i32
  }
  func.func @transform_4(%arg0: i32) -> (i32, i32) {
    %c0_i32 = arith.constant 0 : i32
    %c0_i32_0 = arith.constant 0 : i32
    %c0_i32_1 = arith.constant 0 : i32
    return %c0_i32, %c0_i32_0 : i32, i32
  }
  func.func @transform_5(%arg0: i32) -> (i32, i32) {
    %c0_i32 = arith.constant 0 : i32
    %c0_i32_0 = arith.constant 0 : i32
    %c0_i32_1 = arith.constant 0 : i32
    return %c0_i32, %c0_i32_0 : i32, i32
  }
  func.func @transform_6(%arg0: i32) -> (i32, i32) {
    %c0_i32 = arith.constant 0 : i32
    %c0_i32_0 = arith.constant 0 : i32
    %c0_i32_1 = arith.constant 0 : i32
    return %c0_i32, %c0_i32_0 : i32, i32
  }
  func.func @transform_7(%arg0: i32) -> (i32, i32) {
    %c0_i32 = arith.constant 0 : i32
    %c0_i32_0 = arith.constant 0 : i32
    return %c0_i32, %arg0 : i32, i32
  }
}

</mosaic_0001>

<bundles_post_ra>
// kernel: rotanet_forward.1
= control target key start
LH: loop header
LB: loop body
LE: loop exit
PB: predicated region body
PF: predicated region fallthrough
CT: control target
= control target key end

     0   :  { %vm58_vm0 = vcmask 146432   ;;  %v267_v9 = vmov 0   ;;  %vm159_vm1 = vcmask 1045504   ;;  %vm152_vm2 = vcmask 113664   ;;  %s428_s0 = inlined_call_operand.vmem [shape: f32[8,18], index: 0, kind: input, shape index: {}]   ;;  %s429_s2 = inlined_call_operand.vmem [shape: f32[14,1], index: 2, kind: input, shape index: {}]   ;;  %s430_s6 = inlined_call_operand.<no memory space> [shape: f32[1,1], index: 6, kind: input, shape index: {}]   ;;  %s431_s1 = inlined_call_operand.vmem [shape: f32[14,18], index: 1, kind: input, shape index: {}]   ;;  %s432_s4 = inlined_call_operand.vmem [shape: f32[14,1], index: 4, kind: input, shape index: {}]   ;;  %s433_s5 = inlined_call_operand.vmem [shape: f32[14,1], index: 5, kind: input, shape index: {}]   ;;  %s434_s3 = inlined_call_operand.vmem [shape: f32[14,14], index: 3, kind: input, shape index: {}]   ;;  %s435_s7 = inlined_call_operand.vmem [shape: f32[1,128], index: 7, kind: output, shape index: {}]  }
   0x1   :  { %v43_v0 = vld [vmem:[%s428_s0 + $0x78] sm:$0xff]  ;;  %v42_v1 = vld [vmem:[%s428_s0 + $0x70] sm:$0xff]  ;;  %v41_v2 = vld [vmem:[%s428_s0 + $0x68] sm:$0xff]  ;;  %262 = vset.pattern.permute.xlu0 %v267_v9  ;;  %263 = vset.pattern.permute.xlu1 %v267_v9  ;;  %v12_v12 = vstv %s430_s6 }
   0x2   :  { %224 = vmatpush.xpose.msk.msra.mxu0 %vm58_vm0, %v43_v0  ;;  %245 = vmatpush.xpose.msk.msra.mxu2 %vm58_vm0, %v43_v0  ;;  %v40_v3 = vld [vmem:[%s428_s0 + $0x60] sm:$0xff]  ;;  %v39_v4 = vld [vmem:[%s428_s0 + $0x58] sm:$0xff]  ;;  %v38_v5 = vld [vmem:[%s428_s0 + $0x50] sm:$0xff]  ;;  %13 = vst [vmem:[#allocation2] sm:$0x1] %v12_v12 }
   0x3   :  { %v37_v6 = vld [vmem:[%s428_s0 + $0x48] sm:$0xff]  ;;  %v36_v8 = vld [vmem:[%s428_s0 + $0x40] sm:$0xff]  ;;  %264 = vset.pattern.permute.xlu2 %v267_v9  ;;  %v35_v10 = vld [vmem:[%s428_s0 + $0x38] sm:$0xff] }
   0x4   :  { %v47_v7 = vld [vmem:[%s429_s2 + $0x8] sm:$0x3f]  ;;  %v46_v11 = vld [vmem:[%s429_s2] sm:$0xff]  ;;  %v34_v13 = vld [vmem:[%s428_s0 + $0x30] sm:$0xff] }
   0x5   :  { %55 = vperm.xlu0 %262, %v47_v7   ;;  %v33_v14 = vld [vmem:[%s428_s0 + $0x28] sm:$0xff]  ;;  %v32_v16 = vld [vmem:[%s428_s0 + $0x20] sm:$0xff]  ;;  %v31_v17 = vld [vmem:[%s428_s0 + $0x18] sm:$0xff] }
   0x6   :  { %225 = vmatpush.xpose.msk.msra.mxu0 %vm58_vm0, %v42_v1  ;;  %246 = vmatpush.xpose.msk.msra.mxu2 %vm58_vm0, %v42_v1  ;;  %v30_v18 = vld [vmem:[%s428_s0 + $0x10] sm:$0xff]  ;;  %v29_v19 = vld [vmem:[%s428_s0 + $0x8] sm:$0xff]  ;;  %v28_v20 = vld [vmem:[%s428_s0] sm:$0xff] }
   0x7   :  { %v44_v21 = vld [vmem:[%s431_s1] sm:$0xff]  ;;  %v45_v22 = vld [vmem:[%s431_s1 + $0x8] sm:$0x3f] }
   0x8   :  { %v141_v23 = vld [vmem:[%s432_s4 + $0x8] sm:$0x3f]  ;;  %v140_v24 = vld [vmem:[%s432_s4] sm:$0xff] }
   0x9   :  { %v210_v15 = vld [vmem:[#allocation2] sm:$0x1]  ;;  %149 = vperm.xlu1 %263, %v141_v23   ;;  %v189_v25 = vld [vmem:[%s433_s5 + $0x8] sm:$0x3f] }
   0xa   :  { %226 = vmatpush.xpose.msk.msra.mxu0 %vm58_vm0, %v41_v2  ;;  %247 = vmatpush.xpose.msk.msra.mxu2 %vm58_vm0, %v41_v2  ;;  %v188_v27 = vld [vmem:[%s433_s5] sm:$0xff]  ;;  %v139_v36 = vld [vmem:[%s434_s3 + $0x8] sm:$0x3f] }
   0xb   :  { %197 = vperm.xlu2 %264, %v189_v25   ;;  %v138_v35 = vld [vmem:[%s434_s3] sm:$0xff] }
   0xd   :  { %50 = vperm.xlu0 %262, %v46_v11  }
   0xe   :  { %227 = vmatpush.xpose.msk.msra.mxu0 %vm58_vm0, %v40_v3  ;;  %248 = vmatpush.xpose.msk.msra.mxu2 %vm58_vm0, %v40_v3 }
  0x11   :  { %144 = vperm.xlu1 %263, %v140_v24  }
  0x12   :  { %228 = vmatpush.xpose.msk.msra.mxu0 %vm58_vm0, %v39_v4  ;;  %249 = vmatpush.xpose.msk.msra.mxu2 %vm58_vm0, %v39_v4 }
  0x13   :  { %192 = vperm.xlu2 %264, %v188_v27  }
  0x15   :  { %213 = vperm.xlu0 %262, %v210_v15  }
  0x16   :  { %229 = vmatpush.xpose.msk.msra.mxu0 %vm58_vm0, %v38_v5  ;;  %250 = vmatpush.xpose.msk.msra.mxu2 %vm58_vm0, %v38_v5 }
  0x1a   :  { %230 = vmatpush.xpose.msk.msra.mxu0 %vm58_vm0, %v37_v6  ;;  %251 = vmatpush.xpose.msk.msra.mxu2 %vm58_vm0, %v37_v6 }
  0x1e   :  { %231 = vmatpush.xpose.msk.msra.mxu0 %vm58_vm0, %v36_v8  ;;  %252 = vmatpush.xpose.msk.msra.mxu2 %vm58_vm0, %v36_v8 }
  0x22   :  { %232 = vmatpush.xpose.msk.msra.mxu0 %vm58_vm0, %v35_v10  ;;  %253 = vmatpush.xpose.msk.msra.mxu2 %vm58_vm0, %v35_v10 }
  0x26   :  { %233 = vmatpush.xpose.msk.msra.mxu0 %vm58_vm0, %v34_v13  ;;  %254 = vmatpush.xpose.msk.msra.mxu2 %vm58_vm0, %v34_v13 }
  0x2a   :  { %234 = vmatpush.xpose.msk.msra.mxu0 %vm58_vm0, %v33_v14  ;;  %255 = vmatpush.xpose.msk.msra.mxu2 %vm58_vm0, %v33_v14 }
  0x2e   :  { %235 = vmatpush.xpose.msk.msra.mxu0 %vm58_vm0, %v32_v16  ;;  %256 = vmatpush.xpose.msk.msra.mxu2 %vm58_vm0, %v32_v16 }
  0x32   :  { %236 = vmatpush.xpose.msk.msra.mxu0 %vm58_vm0, %v31_v17  ;;  %257 = vmatpush.xpose.msk.msra.mxu2 %vm58_vm0, %v31_v17 }
  0x36   :  { %237 = vmatpush.xpose.msk.msra.mxu0 %vm58_vm0, %v30_v18  ;;  %258 = vmatpush.xpose.msk.msra.mxu2 %vm58_vm0, %v30_v18 }
  0x3a   :  { %238 = vmatpush.xpose.msk.msra.mxu0 %vm58_vm0, %v29_v19  ;;  %259 = vmatpush.xpose.msk.msra.mxu2 %vm58_vm0, %v29_v19 }
  0x3e   :  { %239 = vmatpush.xpose.msk.msra.mxu0 %vm58_vm0, %v28_v20  ;;  %260 = vmatpush.xpose.msk.msra.mxu2 %vm58_vm0, %v28_v20 }
  0x41   :  { %240 = vmatmul.msk.f32.vlgmr.msra.gmra.mxu0 %vm58_vm0, %v44_v21  ;;  %241 = vmatmul.msk.f32.vlgmr.msra.gmra.mxu2 %vm58_vm0, %v45_v22 }
  0x65   :  { %v198_v39 = vpop.permute.xlu2 %197 }
  0x6d   :  { %v193_v45 = vpop.permute.xlu2 %192 }
  0x77   :  { %v56_v26 = vpop.permute.xlu0 %55 }
  0x7b   :  { %v150_v37 = vpop.permute.xlu1 %149 }
  0x7f   :  { %v51_v29 = vpop.permute.xlu0 %50 }
  0x83   :  { %v145_v40 = vpop.permute.xlu1 %144 }
  0x87   :  { %v214_v55 = vpop.permute.xlu0 %213 }
  0x88   :  { %v216_v57 = vperm.slane %v214_v55, 0 }
  0xbe   :  { %v130_v28 = vpop.f32.mrf.mxu0 }
  0xbf   :  { %v131_v31 = vadd.f32 %v130_v28, %v51_v29 }
  0xc1   :  { %v136_v34 = vmax.f32 %v131_v31, 0.0 }
  0xc4   :  { %v133_v30 = vpop.f32.mrf.mxu2 }
  0xc5   :  { %v134_v32 = vadd.f32 %v133_v30, %v56_v26 }
  0xc7   :  { %v137_v33 = vmax.f32 %v134_v32, 0.0 }
  0xc9   :  { %242 = vmatpush.msk.msra.mxu1 %vm159_vm1, %v137_v33 }
  0xcb   :  { %178 = vmatpush.msra.mxu1 %v136_v34 }
  0xcc   :  { %243 = vmatmul.msk.f32.vlgmr.msra.gmra.mxu1 %vm152_vm2, %v138_v35 }
  0xd4   :  { %244 = vmatmul.msk.f32.gmra.mxu1 %vm152_vm2, %v139_v36 }
 0x149   :  { %v180_v38 = vpop.f32.mrf.mxu1 }
 0x14a   :  { %v181_v41 = vadd.f32 %v180_v38, %v145_v40 }
 0x14c   :  { %v186_v44 = vmax.f32 %v181_v41, 0.0 }
 0x14e   :  { %v200_v48 = vmul.f32 %v193_v45, %v186_v44 }
 0x151   :  { %v183_v42 = vpop.f32.mrf.mxu1 }
 0x152   :  { %v184_v43 = vadd.f32 %v183_v42, %v150_v37 }
 0x154   :  { %v187_v46 = vmax.f32 %v184_v43, 0.0 }
 0x156   :  { %v201_v47 = vmul.f32 %v198_v39, %v187_v46 }
 0x158   :  { %v202_v49 = vsel %vm159_vm1, %v201_v47, 0.0 }
 0x159   :  { %v203_v50 = vadd.f32 %v202_v49, %v200_v48 }
 0x15b   :  { %v204_v51 = vrot.slane %v203_v50, 4 }
 0x15d   :  { %v205_v52 = vadd.f32 %v204_v51, %v203_v50 }
 0x15f   :  { %v206_v53 = vrot.slane %v205_v52, 2 }
 0x161   :  { %v207_v54 = vadd.f32 %v206_v53, %v205_v52 }
 0x163   :  { %v208_v56 = vrot.slane %v207_v54, 1 }
 0x165   :  { %v209_v58 = vadd.f32 %v208_v56, %v207_v54 }
 0x167   :  { %v217_v59 = vadd.f32 %v216_v57, %v209_v58 }
 0x169   :  { %265 = vtanh.f32 %v217_v59 }
 0x16f   :  { %v266_v60 = vpop.eup %265 }
 0x170   :  { %219 = vst [vmem:[%s435_s7] sm:$0x1] %v266_v60 }

</bundles_post_ra>
